<compile_context>
chip_gen: v7x
topology: tpu7x:2x2x1
jax: 0.10.0
libtpu: 0.0.40
codegen_flags: <defaults>
</compile_context>

<pallas_src>
import math
import jax
import jax.numpy as jnp
from jax import lax
from jax.experimental import pallas as pl
from jax.experimental.pallas import tpu as pltpu

_SQRT2 = math.sqrt(2.0)
_LN_EPS = 1e-5


def projection_head_kernel(x_ref, w1_ref, w2_ref, params_ref, o_ref):
    # Cast the streamed activation to bf16 *inside* the kernel (MXU input);
    # accumulation stays f32 via preferred_element_type.
    x = x_ref[...].astype(jnp.bfloat16)          # (TB, E) bf16
    w1 = w1_ref[...]                             # (E, P)  bf16 (resident)
    w2 = w2_ref[...]                             # (P, P)  bf16 (resident)

    params = params_ref[...]                     # (4, P) f32 (resident)
    b1 = params[0:1, :]
    b2 = params[1:2, :]
    gamma = params[2:3, :]
    beta = params[3:4, :]

    # projection: Linear(embedding_dim -> projection_dim)
    projected = jnp.dot(x, w1, preferred_element_type=jnp.float32) + b1

    # exact GELU (erf form, matches torch.nn.GELU default)
    h = 0.5 * projected * (1.0 + lax.erf(projected * (1.0 / _SQRT2)))

    # fc: Linear(projection_dim -> projection_dim); bf16 into the MXU again.
    y = jnp.dot(h.astype(jnp.bfloat16), w2, preferred_element_type=jnp.float32) + b2

    # dropout: identity in inference mode
    # TODO(synk): training-mode dropout (Bernoulli mask + 1/(1-p) scaling via
    # pltpu.prng_random_bits) not implemented; eval semantics used.

    # residual from pre-GELU projection
    y = y + projected

    # LayerNorm over the last (projection) dim — centered two-pass statistics
    # to avoid cancellation (residual + biases can give large per-row means).
    mean = jnp.mean(y, axis=-1, keepdims=True)
    d = y - mean
    var = jnp.mean(d * d, axis=-1, keepdims=True)
    out = d * lax.rsqrt(var + _LN_EPS)
    out = out * gamma + beta

    o_ref[...] = out.astype(o_ref.dtype)


def _build_call(B, E, P, tb, in_dtype, out_dtype, single_buffer_constants):
    grid = (pl.cdiv(B, tb),)

    def resident(shape):
        # Constant block index across the grid -> fetched once, stays in VMEM.
        if single_buffer_constants:
            # No need to double-buffer something that never changes.
            return pl.BlockSpec(shape, lambda i: (0, 0),
                                pipeline_mode=pl.Buffered(1))
        return pl.BlockSpec(shape, lambda i: (0, 0))

    cost = pl.CostEstimate(
        flops=2 * B * E * P + 2 * B * P * P,
        transcendentals=B * P,                         # erf per output element
        bytes_accessed=(B * E * jnp.dtype(in_dtype).itemsize   # x (native dtype)
                        + E * P * 2 + P * P * 2                # bf16 weights
                        + 4 * P * 4                            # packed params f32
                        + B * P * jnp.dtype(out_dtype).itemsize),
    )

    return pl.pallas_call(
        projection_head_kernel,
        out_shape=jax.ShapeDtypeStruct((B, P), out_dtype),
        grid=grid,
        in_specs=[
            pl.BlockSpec((tb, E), lambda i: (i, 0)),   # x   (pipelined over batch)
            resident((E, P)),                          # W1  (fetched once)
            resident((P, P)),                          # W2  (fetched once)
            resident((4, P)),                          # [b1; b2; gamma; beta]
        ],
        out_specs=pl.BlockSpec((tb, P), lambda i: (i, 0)),
        compiler_params=pltpu.CompilerParams(
            dimension_semantics=("parallel",)),        # shards across v7x's 2 TCs
        cost_estimate=cost,
    )


def projection_head(x, w1, b1, w2, b2, gamma, beta, *, tb=None):
    """x: (B, E) -> (B, P). Weights stored as (in, out) so kernel does x @ W."""
    B, E = x.shape
    P = w1.shape[1]

    # Batch tile: big tiles amortize the ~0.35 us per-grid-step overhead.
    # 512 rows of P=256 f32 intermediates (~4 tiles of tb*P*4 B) plus
    # double-buffered x/out stays far under the default scoped-VMEM limit on
    # v5e (16 MiB) / v6e (32 MiB) / v7x (32 MiB of 64 MiB). Tunable via tb=.
    if tb is None:
        tb = min(B, 512)

    # Weights in bf16 once (callers holding bf16 weights skip this entirely);
    # x stays in its native dtype and is cast inside the kernel.
    w1_bf = w1.astype(jnp.bfloat16)
    w2_bf = w2.astype(jnp.bfloat16)

    # Pack the four P-vectors into one resident (4, P) f32 block.
    params = jnp.stack([
        b1.astype(jnp.float32),
        b2.astype(jnp.float32),
        gamma.astype(jnp.float32),
        beta.astype(jnp.float32),
    ], axis=0)

    try:
        call = _build_call(B, E, P, tb, x.dtype, x.dtype,
                           single_buffer_constants=True)
        return call(x, w1_bf, w2_bf, params)
    except Exception:
        # Fallback: some Pallas builds may reject single-buffered block specs;
        # default double-buffering of the small constants is still correct.
        call = _build_call(B, E, P, tb, x.dtype, x.dtype,
                           single_buffer_constants=False)
        return call(x, w1_bf, w2_bf, params)


def projection_head_ref(x, w1, b1, w2, b2, gamma, beta):
    """Pure-JAX reference mirroring the kernel's bf16 MXU inputs.

    Note: this validates self-consistency with the kernel's bf16 matmul inputs;
    it deviates from a pure-f32 PyTorch run by normal bf16 rounding error.
    """
    xf = x.astype(jnp.bfloat16).astype(jnp.float32)
    w1f = w1.astype(jnp.bfloat16).astype(jnp.float32)
    w2f = w2.astype(jnp.bfloat16).astype(jnp.float32)
    projected = xf @ w1f + b1
    h = 0.5 * projected * (1.0 + lax.erf(projected / _SQRT2))
    h = h.astype(jnp.bfloat16).astype(jnp.float32)
    y = h @ w2f + b2
    y = y + projected
    mean = jnp.mean(y, axis=-1, keepdims=True)
    var = jnp.mean((y - mean) ** 2, axis=-1, keepdims=True)
    y = (y - mean) * lax.rsqrt(var + _LN_EPS)
    return (y * gamma + beta).astype(x.dtype)


if __name__ == "__main__":
    # Small, module-consistent shapes: batch=8, embedding_dim=32, projection_dim=256.
    B, E, P = 8, 32, 256

    key = jax.random.PRNGKey(0)
    kx, kw1, kb1, kw2, kb2 = jax.random.split(key, 5)

    x = jax.random.normal(kx, (B, E), dtype=jnp.float32)

    # Deterministic synthetic parameter init (Linear weights stored as (in, out)).
    w1 = jax.random.normal(kw1, (E, P), dtype=jnp.float32) * (1.0 / math.sqrt(E))
    b1 = jax.random.normal(kb1, (P,), dtype=jnp.float32) * 0.01
    w2 = jax.random.normal(kw2, (P, P), dtype=jnp.float32) * (1.0 / math.sqrt(P))
    b2 = jax.random.normal(kb2, (P,), dtype=jnp.float32) * 0.01
    gamma = jnp.ones((P,), dtype=jnp.float32)
    beta = jnp.zeros((P,), dtype=jnp.float32)

    out = projection_head(x, w1, b1, w2, b2, gamma, beta)
    out = jax.block_until_ready(out)

    ref = projection_head_ref(x, w1, b1, w2, b2, gamma, beta)
    assert out.shape == (B, P)
    # bf16 MXU inputs (mirrored in the reference) -> slightly looser tolerance.
    assert jnp.allclose(out, ref, atol=1e-2, rtol=1e-2), "mismatch vs reference"

    print("KERNEL_OK")
</pallas_src>

<mosaic_0001>
module attributes {stable_mosaic.version = 11 : i64} {
  func.func @projection_head_kernel(%arg0: i32, %arg1: memref<8x32xf32, #tpu.memory_space<vmem>>, %arg2: memref<32x256xbf16, #tpu.memory_space<vmem>>, %arg3: memref<256x256xbf16, #tpu.memory_space<vmem>>, %arg4: memref<4x256xf32, #tpu.memory_space<vmem>>, %arg5: memref<8x256xf32, #tpu.memory_space<vmem>>) attributes {dimension_semantics = [#tpu.dimension_semantics<parallel>], iteration_bounds = array<i64: 1>, scalar_prefetch = 0 : i64, scratch_operands = 0 : i64, tpu.core_type = #tpu.core_type<tc>, window_params = [{transform_indices = @transform_0, window_bounds = array<i64: 8, 32>}, {pipeline_mode = #tpu.pipeline_mode<synchronous>, transform_indices = @transform_1, window_bounds = array<i64: 32, 256>}, {pipeline_mode = #tpu.pipeline_mode<synchronous>, transform_indices = @transform_2, window_bounds = array<i64: 256, 256>}, {pipeline_mode = #tpu.pipeline_mode<synchronous>, transform_indices = @transform_3, window_bounds = array<i64: 4, 256>}, {transform_indices = @transform_4, window_bounds = array<i64: 8, 256>}]} {
    %c0 = arith.constant 0 : index
    %c0_0 = arith.constant 0 : index
    %0 = vector.load %arg1[%c0, %c0_0] : memref<8x32xf32, #tpu.memory_space<vmem>>, vector<8x32xf32>
    %1 = arith.truncf %0 : vector<8x32xf32> to vector<8x32xbf16>
    %c0_1 = arith.constant 0 : index
    %c0_2 = arith.constant 0 : index
    %2 = vector.load %arg2[%c0_1, %c0_2] : memref<32x256xbf16, #tpu.memory_space<vmem>>, vector<32x256xbf16>
    %c0_3 = arith.constant 0 : index
    %c0_4 = arith.constant 0 : index
    %3 = vector.load %arg3[%c0_3, %c0_4] : memref<256x256xbf16, #tpu.memory_space<vmem>>, vector<256x256xbf16>
    %c0_5 = arith.constant 0 : index
    %c0_6 = arith.constant 0 : index
    %4 = vector.load %arg4[%c0_5, %c0_6] : memref<4x256xf32, #tpu.memory_space<vmem>>, vector<4x256xf32>
    %5 = vector.extract_strided_slice %4 {offsets = [0, 0], sizes = [1, 256], strides = [1, 1]} : vector<4x256xf32> to vector<1x256xf32>
    %6 = vector.extract_strided_slice %4 {offsets = [1, 0], sizes = [1, 256], strides = [1, 1]} : vector<4x256xf32> to vector<1x256xf32>
    %7 = vector.extract_strided_slice %4 {offsets = [2, 0], sizes = [1, 256], strides = [1, 1]} : vector<4x256xf32> to vector<1x256xf32>
    %8 = vector.extract_strided_slice %4 {offsets = [3, 0], sizes = [1, 256], strides = [1, 1]} : vector<4x256xf32> to vector<1x256xf32>
    %cst = arith.constant dense<0.000000e+00> : vector<8x256xf32>
    %9 = tpu.matmul %1, %2, %cst {dimension_numbers = #tpu.dot_dimension_numbers<[1], [0], [0], [1], [0, 0, 1, 1], [], []>} : vector<8x32xbf16>, vector<32x256xbf16>, vector<8x256xf32> -> vector<8x256xf32>
    %10 = vector.broadcast %5 : vector<1x256xf32> to vector<8x256xf32>
    %11 = arith.addf %9, %10 : vector<8x256xf32>
    %cst_7 = arith.constant 5.000000e-01 : f32
    %12 = vector.broadcast %cst_7 : f32 to vector<8x256xf32>
    %13 = arith.mulf %12, %11 : vector<8x256xf32>
    %cst_8 = arith.constant 0.707106769 : f32
    %14 = vector.broadcast %cst_8 : f32 to vector<8x256xf32>
    %15 = arith.mulf %11, %14 : vector<8x256xf32>
    %16 = math.erf %15 : vector<8x256xf32>
    %cst_9 = arith.constant 1.000000e+00 : f32
    %17 = vector.broadcast %cst_9 : f32 to vector<8x256xf32>
    %18 = arith.addf %17, %16 : vector<8x256xf32>
    %19 = arith.mulf %13, %18 : vector<8x256xf32>
    %20 = arith.truncf %19 : vector<8x256xf32> to vector<8x256xbf16>
    %cst_10 = arith.constant dense<0.000000e+00> : vector<8x256xf32>
    %21 = tpu.matmul %20, %3, %cst_10 {dimension_numbers = #tpu.dot_dimension_numbers<[1], [0], [0], [1], [0, 0, 1, 1], [], []>} : vector<8x256xbf16>, vector<256x256xbf16>, vector<8x256xf32> -> vector<8x256xf32>
    %22 = vector.broadcast %6 : vector<1x256xf32> to vector<8x256xf32>
    %23 = arith.addf %21, %22 : vector<8x256xf32>
    %24 = arith.addf %23, %11 : vector<8x256xf32>
    %cst_11 = arith.constant dense<0.000000e+00> : vector<8xf32>
    %25 = vector.multi_reduction <add>, %24, %cst_11 [1] : vector<8x256xf32> to vector<8xf32>
    %26 = vector.shape_cast %25 : vector<8xf32> to vector<8x1xf32>
    %cst_12 = arith.constant 2.560000e+02 : f32
    %27 = vector.broadcast %cst_12 : f32 to vector<8x1xf32>
    %28 = arith.divf %26, %27 : vector<8x1xf32>
    %29 = vector.broadcast %28 : vector<8x1xf32> to vector<8x256xf32>
    %30 = arith.subf %24, %29 : vector<8x256xf32>
    %31 = arith.mulf %30, %30 : vector<8x256xf32>
    %cst_13 = arith.constant dense<0.000000e+00> : vector<8xf32>
    %32 = vector.multi_reduction <add>, %31, %cst_13 [1] : vector<8x256xf32> to vector<8xf32>
    %33 = vector.shape_cast %32 : vector<8xf32> to vector<8x1xf32>
    %cst_14 = arith.constant 2.560000e+02 : f32
    %34 = vector.broadcast %cst_14 : f32 to vector<8x1xf32>
    %35 = arith.divf %33, %34 : vector<8x1xf32>
    %cst_15 = arith.constant 9.99999974E-6 : f32
    %36 = vector.broadcast %cst_15 : f32 to vector<8x1xf32>
    %37 = arith.addf %35, %36 : vector<8x1xf32>
    %38 = math.rsqrt %37 : vector<8x1xf32>
    %39 = vector.broadcast %38 : vector<8x1xf32> to vector<8x256xf32>
    %40 = arith.mulf %30, %39 : vector<8x256xf32>
    %41 = vector.broadcast %7 : vector<1x256xf32> to vector<8x256xf32>
    %42 = arith.mulf %40, %41 : vector<8x256xf32>
    %43 = vector.broadcast %8 : vector<1x256xf32> to vector<8x256xf32>
    %44 = arith.addf %42, %43 : vector<8x256xf32>
    %c0_16 = arith.constant 0 : index
    %c0_17 = arith.constant 0 : index
    %45 = vector.load %arg5[%c0_16, %c0_17] : memref<8x256xf32, #tpu.memory_space<vmem>>, vector<8x256xf32>
    tpu.vector_store %arg5[%c0_16, %c0_17], %44 {strides = array<i32>} : memref<8x256xf32, #tpu.memory_space<vmem>>, vector<8x256xf32>,
    return
  }
  func.func @transform_0(%arg0: i32) -> (i32, i32) {
    %c0_i32 = arith.constant 0 : i32
    %c0_i32_0 = arith.constant 0 : i32
    return %arg0, %c0_i32 : i32, i32
  }
  func.func @transform_1(%arg0: i32) -> (i32, i32) {
    %c0_i32 = arith.constant 0 : i32
    %c0_i32_0 = arith.constant 0 : i32
    %c0_i32_1 = arith.constant 0 : i32
    return %c0_i32, %c0_i32_0 : i32, i32
  }
  func.func @transform_2(%arg0: i32) -> (i32, i32) {
    %c0_i32 = arith.constant 0 : i32
    %c0_i32_0 = arith.constant 0 : i32
    %c0_i32_1 = arith.constant 0 : i32
    return %c0_i32, %c0_i32_0 : i32, i32
  }
  func.func @transform_3(%arg0: i32) -> (i32, i32) {
    %c0_i32 = arith.constant 0 : i32
    %c0_i32_0 = arith.constant 0 : i32
    %c0_i32_1 = arith.constant 0 : i32
    return %c0_i32, %c0_i32_0 : i32, i32
  }
  func.func @transform_4(%arg0: i32) -> (i32, i32) {
    %c0_i32 = arith.constant 0 : i32
    %c0_i32_0 = arith.constant 0 : i32
    return %arg0, %c0_i32 : i32, i32
  }
}

module attributes {stable_mosaic.version = 11 : i64} {
  func.func @projection_head_kernel(%arg0: i32, %arg1: memref<8x32xf32, #tpu.memory_space<vmem>>, %arg2: memref<32x256xbf16, #tpu.memory_space<vmem>>, %arg3: memref<256x256xbf16, #tpu.memory_space<vmem>>, %arg4: memref<4x256xf32, #tpu.memory_space<vmem>>, %arg5: memref<8x256xf32, #tpu.memory_space<vmem>>) attributes {dimension_semantics = [#tpu.dimension_semantics<parallel>], iteration_bounds = array<i64: 1>, scalar_prefetch = 0 : i64, scratch_operands = 0 : i64, tpu.core_type = #tpu.core_type<tc>, window_params = [{transform_indices = @transform_0, window_bounds = array<i64: 8, 32>}, {pipeline_mode = #tpu.pipeline_mode<synchronous>, transform_indices = @transform_1, window_bounds = array<i64: 32, 256>}, {pipeline_mode = #tpu.pipeline_mode<synchronous>, transform_indices = @transform_2, window_bounds = array<i64: 256, 256>}, {pipeline_mode = #tpu.pipeline_mode<synchronous>, transform_indices = @transform_3, window_bounds = array<i64: 4, 256>}, {transform_indices = @transform_4, window_bounds = array<i64: 8, 256>}]} {
    %c0 = arith.constant 0 : index
    %c0_0 = arith.constant 0 : index
    %0 = vector.load %arg1[%c0, %c0_0] : memref<8x32xf32, #tpu.memory_space<vmem>>, vector<8x32xf32>
    %1 = arith.truncf %0 : vector<8x32xf32> to vector<8x32xbf16>
    %c0_1 = arith.constant 0 : index
    %c0_2 = arith.constant 0 : index
    %2 = vector.load %arg2[%c0_1, %c0_2] : memref<32x256xbf16, #tpu.memory_space<vmem>>, vector<32x256xbf16>
    %c0_3 = arith.constant 0 : index
    %c0_4 = arith.constant 0 : index
    %3 = vector.load %arg3[%c0_3, %c0_4] : memref<256x256xbf16, #tpu.memory_space<vmem>>, vector<256x256xbf16>
    %c0_5 = arith.constant 0 : index
    %c0_6 = arith.constant 0 : index
    %4 = vector.load %arg4[%c0_5, %c0_6] : memref<4x256xf32, #tpu.memory_space<vmem>>, vector<4x256xf32>
    %5 = vector.extract_strided_slice %4 {offsets = [0, 0], sizes = [1, 256], strides = [1, 1]} : vector<4x256xf32> to vector<1x256xf32>
    %6 = vector.extract_strided_slice %4 {offsets = [1, 0], sizes = [1, 256], strides = [1, 1]} : vector<4x256xf32> to vector<1x256xf32>
    %7 = vector.extract_strided_slice %4 {offsets = [2, 0], sizes = [1, 256], strides = [1, 1]} : vector<4x256xf32> to vector<1x256xf32>
    %8 = vector.extract_strided_slice %4 {offsets = [3, 0], sizes = [1, 256], strides = [1, 1]} : vector<4x256xf32> to vector<1x256xf32>
    %cst = arith.constant dense<0.000000e+00> : vector<8x256xf32>
    %9 = tpu.matmul %1, %2, %cst {dimension_numbers = #tpu.dot_dimension_numbers<[1], [0], [0], [1], [0, 0, 1, 1], [], []>} : vector<8x32xbf16>, vector<32x256xbf16>, vector<8x256xf32> -> vector<8x256xf32>
    %10 = vector.broadcast %5 : vector<1x256xf32> to vector<8x256xf32>
    %11 = arith.addf %9, %10 : vector<8x256xf32>
    %cst_7 = arith.constant 5.000000e-01 : f32
    %12 = vector.broadcast %cst_7 : f32 to vector<8x256xf32>
    %13 = arith.mulf %12, %11 : vector<8x256xf32>
    %cst_8 = arith.constant 0.707106769 : f32
    %14 = vector.broadcast %cst_8 : f32 to vector<8x256xf32>
    %15 = arith.mulf %11, %14 : vector<8x256xf32>
    %16 = math.erf %15 : vector<8x256xf32>
    %cst_9 = arith.constant 1.000000e+00 : f32
    %17 = vector.broadcast %cst_9 : f32 to vector<8x256xf32>
    %18 = arith.addf %17, %16 : vector<8x256xf32>
    %19 = arith.mulf %13, %18 : vector<8x256xf32>
    %20 = arith.truncf %19 : vector<8x256xf32> to vector<8x256xbf16>
    %cst_10 = arith.constant dense<0.000000e+00> : vector<8x256xf32>
    %21 = tpu.matmul %20, %3, %cst_10 {dimension_numbers = #tpu.dot_dimension_numbers<[1], [0], [0], [1], [0, 0, 1, 1], [], []>} : vector<8x256xbf16>, vector<256x256xbf16>, vector<8x256xf32> -> vector<8x256xf32>
    %22 = vector.broadcast %6 : vector<1x256xf32> to vector<8x256xf32>
    %23 = arith.addf %21, %22 : vector<8x256xf32>
    %24 = arith.addf %23, %11 : vector<8x256xf32>
    %cst_11 = arith.constant dense<0.000000e+00> : vector<8xf32>
    %25 = vector.multi_reduction <add>, %24, %cst_11 [1] : vector<8x256xf32> to vector<8xf32>
    %26 = vector.shape_cast %25 : vector<8xf32> to vector<8x1xf32>
    %cst_12 = arith.constant 2.560000e+02 : f32
    %27 = vector.broadcast %cst_12 : f32 to vector<8x1xf32>
    %28 = arith.divf %26, %27 : vector<8x1xf32>
    %29 = vector.broadcast %28 : vector<8x1xf32> to vector<8x256xf32>
    %30 = arith.subf %24, %29 : vector<8x256xf32>
    %31 = arith.mulf %30, %30 : vector<8x256xf32>
    %cst_13 = arith.constant dense<0.000000e+00> : vector<8xf32>
    %32 = vector.multi_reduction <add>, %31, %cst_13 [1] : vector<8x256xf32> to vector<8xf32>
    %33 = vector.shape_cast %32 : vector<8xf32> to vector<8x1xf32>
    %cst_14 = arith.constant 2.560000e+02 : f32
    %34 = vector.broadcast %cst_14 : f32 to vector<8x1xf32>
    %35 = arith.divf %33, %34 : vector<8x1xf32>
    %cst_15 = arith.constant 9.99999974E-6 : f32
    %36 = vector.broadcast %cst_15 : f32 to vector<8x1xf32>
    %37 = arith.addf %35, %36 : vector<8x1xf32>
    %38 = math.rsqrt %37 : vector<8x1xf32>
    %39 = vector.broadcast %38 : vector<8x1xf32> to vector<8x256xf32>
    %40 = arith.mulf %30, %39 : vector<8x256xf32>
    %41 = vector.broadcast %7 : vector<1x256xf32> to vector<8x256xf32>
    %42 = arith.mulf %40, %41 : vector<8x256xf32>
    %43 = vector.broadcast %8 : vector<1x256xf32> to vector<8x256xf32>
    %44 = arith.addf %42, %43 : vector<8x256xf32>
    %c0_16 = arith.constant 0 : index
    %c0_17 = arith.constant 0 : index
    %45 = vector.load %arg5[%c0_16, %c0_17] : memref<8x256xf32, #tpu.memory_space<vmem>>, vector<8x256xf32>
    tpu.vector_store %arg5[%c0_16, %c0_17], %44 {strides = array<i32>} : memref<8x256xf32, #tpu.memory_space<vmem>>, vector<8x256xf32>,
    return
  }
  func.func @transform_0(%arg0: i32) -> (i32, i32) {
    %c0_i32 = arith.constant 0 : i32
    %c0_i32_0 = arith.constant 0 : i32
    return %arg0, %c0_i32 : i32, i32
  }
  func.func @transform_1(%arg0: i32) -> (i32, i32) {
    %c0_i32 = arith.constant 0 : i32
    %c0_i32_0 = arith.constant 0 : i32
    %c0_i32_1 = arith.constant 0 : i32
    return %c0_i32, %c0_i32_0 : i32, i32
  }
  func.func @transform_2(%arg0: i32) -> (i32, i32) {
    %c0_i32 = arith.constant 0 : i32
    %c0_i32_0 = arith.constant 0 : i32
    %c0_i32_1 = arith.constant 0 : i32
    return %c0_i32, %c0_i32_0 : i32, i32
  }
  func.func @transform_3(%arg0: i32) -> (i32, i32) {
    %c0_i32 = arith.constant 0 : i32
    %c0_i32_0 = arith.constant 0 : i32
    %c0_i32_1 = arith.constant 0 : i32
    return %c0_i32, %c0_i32_0 : i32, i32
  }
  func.func @transform_4(%arg0: i32) -> (i32, i32) {
    %c0_i32 = arith.constant 0 : i32
    %c0_i32_0 = arith.constant 0 : i32
    return %arg0, %c0_i32 : i32, i32
  }
}

</mosaic_0001>

<bundles_post_ra>
// kernel: tpu_custom_call.1
= control target key start
LH: loop header
LB: loop body
LE: loop exit
PB: predicated region body
PF: predicated region fallthrough
CT: control target
= control target key end

     0   :  { %9 = vsyncpa [#allocation3], 0  ;;  %s796_s0 = inlined_call_operand.hbm [shape: f32[8,32], index: 0, kind: input, shape index: {}]   ;;  %s797_s1 = inlined_call_operand.hbm [shape: bf16[32,256], index: 1, kind: input, shape index: {}]   ;;  %s798_s2 = inlined_call_operand.hbm [shape: bf16[256,256], index: 2, kind: input, shape index: {}]   ;;  %s799_s3 = inlined_call_operand.vmem [shape: f32[4,256], index: 3, kind: input, shape index: {}]   ;;  %s800_s4 = inlined_call_operand.hbm [shape: f32[8,256], index: 4, kind: output, shape index: {}]  }
   0x1   :  { %10 = vsyncpa [#allocation6], 0 }
   0x2   :  { %11 = vsyncpa [#allocation4], 0  ;;  %s687_s15 = smov [#allocation5]   ;;  %s593_s19 = scalar_lea.hbm %s797_s1, 512 }
   0x3   :  { %s27_s16 = sshll.u32 %s687_s15, 4  ;;  %p594_p0 = scmp.ne.s32.totalorder %s797_s1, %s593_s19  ;;  %s28_s16 = int_to_ptr.vmem [resolvable:$true] %s27_s16 }
   0x4   :  { %p597_p1 = scmp.lt.u32.totalorder %s593_s19, %s797_s1 }
   0x6   :  { %p599_p2 = pnand %p597_p1, %p594_p0 }
   0x8   :  { %602 = shalt.err (!%p599_p2)
}
   0x9   :  { %s603_s24 = scalar_lea.vmem %s28_s16, 512  ;;  %p608_p4 = scmp.lt.s32.totalorder %s28_s16, %s28_s16 }
   0xa   :  { %p604_p3 = scmp.ne.s32.totalorder %s28_s16, %s603_s24  ;;  %p609_p5 = scmp.lt.s32.totalorder %s603_s24, %s603_s24 }
   0xc   :  { %p610_p6 = por %p609_p5, %p608_p4 }
   0xe   :  { %p611_p7 = pnand %p610_p6, %p604_p3 }
  0x10   :  { %614 = shalt.err (!%p611_p7)
}
  0x11   :  { %s688_s25 = smov 128   ;;  %s689_s26 = smov 8  }
  0x12   :  { %33 = dma.hbm_to_vmem [thread:$0]  %s797_s1, 512, %s28_s16, [#allocation6], %s688_s25, %s688_s25, %s689_s26  }
  0x13   :  { %s690_s29 = smov [#allocation2]   ;;  %s691_s5 = smov [#allocation7]  }
  0x14   :  { %s18_s30 = sshll.u32 %s690_s29, 4  ;;  %s39_s6 = sshll.u32 %s691_s5, 4  ;;  %s19_s30 = int_to_ptr.vmem [resolvable:$true] %s18_s30  ;;  %s40_s6 = int_to_ptr.vmem [resolvable:$true] %s39_s6 }
  0x15   :  { %s615_s9 = scalar_lea.hbm %s796_s0, 128 }
  0x16   :  { %p616_p8 = scmp.ne.s32.totalorder %s796_s0, %s615_s9  ;;  %p619_p9 = scmp.lt.u32.totalorder %s615_s9, %s796_s0 }
  0x18   :  { %p621_p10 = pnand %p619_p9, %p616_p8 }
  0x1a   :  { %624 = shalt.err (!%p621_p10)
}
  0x1b   :  { %s625_s1 = scalar_lea.vmem %s19_s30, 128  ;;  %p630_p12 = scmp.lt.s32.totalorder %s19_s30, %s19_s30 }
  0x1c   :  { %p626_p11 = scmp.ne.s32.totalorder %s19_s30, %s625_s1  ;;  %p631_p13 = scmp.lt.s32.totalorder %s625_s1, %s625_s1 }
  0x1e   :  { %p632_p0 = por %p631_p13, %p630_p12 }
  0x20   :  { %p633_p1 = pnand %p632_p0, %p626_p11 }
  0x22   :  { %636 = shalt.err (!%p633_p1)
}
  0x23   :  { %21 = dma.hbm_to_vmem [thread:$0]  %s796_s0, 128, %s19_s30, [#allocation3]  }
  0x24   :  { %s637_s18 = scalar_lea.hbm %s798_s2, 4096 }
  0x25   :  { %p638_p2 = scmp.ne.s32.totalorder %s798_s2, %s637_s18  ;;  %p641_p3 = scmp.lt.u32.totalorder %s637_s18, %s798_s2 }
  0x27   :  { %p643_p4 = pnand %p641_p3, %p638_p2 }
  0x29   :  { %646 = shalt.err (!%p643_p4)
}
  0x2a   :  { %s647_s23 = scalar_lea.vmem %s40_s6, 4096  ;;  %p652_p6 = scmp.lt.s32.totalorder %s40_s6, %s40_s6 }
  0x2b   :  { %p648_p5 = scmp.ne.s32.totalorder %s40_s6, %s647_s23  ;;  %p653_p7 = scmp.lt.s32.totalorder %s647_s23, %s647_s23 }
  0x2d   :  { %p654_p8 = por %p653_p7, %p652_p6 }
  0x2f   :  { %p655_p9 = pnand %p654_p8, %p648_p5 }
  0x31   :  { %658 = shalt.err (!%p655_p9)
}
  0x32   :  { %45 = dma.hbm_to_vmem [thread:$0]  %s798_s2, 4096, %s40_s6, [#allocation6], %s688_s25, %s688_s25, %s689_s26  }
  0x33   :  { %681 = dma.done.wait [#allocation3], 128  }
  0x34   :  { %682 = vsyncadd [#allocation3], 4294967168 }
  0x35   :  { %683 = dma.done.wait [#allocation6], 4608  }
  0x36   :  { %684 = vsyncadd [#allocation6], 4294962688  ;;  %v692_v0 = vmov 0   ;;  %v533_v1 = vld [vmem:[#allocation5 + $0x4] ss:$8 sps:$4 sm:$0xff]   ;;  %v58_v5 = vld [vmem:[#allocation2] sm:$0xff]  ;;  %v98_v39 = vlaneseq }
  0x37   :  { %172 = vmatprep.mubr.bf16.mxu0 %v692_v0  ;;  %v535_v2 = vld [vmem:[#allocation5] ss:$8 sps:$4 sm:$0xff]   ;;  %140 = vmatprep.subr.bf16.mxu0 %v533_v1  ;;  %v536_v3 = vld [vmem:[#allocation5 + $0x14] ss:$8 sps:$4 sm:$0xff]   ;;  %v538_v4 = vld [vmem:[#allocation5 + $0x10] ss:$8 sps:$4 sm:$0xff]   ;;  %v59_v9 = vpack.c.bf16 %v58_v5, %v58_v5 }
  0x38   :  { %141 = vmatpush1.bf16.msra.mxu0 %v535_v2  ;;  %v539_v6 = vld [vmem:[#allocation7 + $0x4] ss:$8 sps:$4 sm:$0xff]   ;;  %v541_v7 = vld [vmem:[#allocation7] ss:$8 sps:$4 sm:$0xff]   ;;  %v542_v8 = vld [vmem:[#allocation7 + $0x14] ss:$8 sps:$4 sm:$0xff]  }
  0x39   :  { %142 = vmatprep.subr.bf16.mxu0 %v536_v3  ;;  %371 = vmatprep.subr.bf16.mxu1 %v539_v6  ;;  %v544_v10 = vld [vmem:[#allocation7 + $0x10] ss:$8 sps:$4 sm:$0xff]   ;;  %vm136_vm0 = vcmask 261120   ;;  %v545_v11 = vld [vmem:[#allocation7 + $0x24] ss:$8 sps:$4 sm:$0xff]   ;;  %v761_v40 = vshrl.u32 %v98_v39, 7 }
  0x3a   :  { %372 = vmatpush1.bf16.msra.mxu1 %v541_v7  ;;  %v547_v12 = vld [vmem:[#allocation7 + $0x20] ss:$8 sps:$4 sm:$0xff]   ;;  %v548_v13 = vld [vmem:[#allocation7 + $0x34] ss:$8 sps:$4 sm:$0xff]   ;;  %v550_v14 = vld [vmem:[#allocation7 + $0x30] ss:$8 sps:$4 sm:$0xff]  }
  0x3b   :  { %373 = vmatprep.subr.bf16.mxu1 %v542_v8  ;;  %v551_v15 = vld [vmem:[#allocation7 + $0x44] ss:$8 sps:$4 sm:$0xff]   ;;  %v553_v16 = vld [vmem:[#allocation7 + $0x40] ss:$8 sps:$4 sm:$0xff]   ;;  %v554_v17 = vld [vmem:[#allocation7 + $0x54] ss:$8 sps:$4 sm:$0xff]  }
  0x3c   :  { %143 = vmatpush1.bf16.msra.mxu0 %v538_v4  ;;  %v556_v18 = vld [vmem:[#allocation7 + $0x50] ss:$8 sps:$4 sm:$0xff]   ;;  %v557_v19 = vld [vmem:[#allocation7 + $0x64] ss:$8 sps:$4 sm:$0xff]   ;;  %v559_v20 = vld [vmem:[#allocation7 + $0x60] ss:$8 sps:$4 sm:$0xff]  }
  0x3d   :  { %v560_v21 = vld [vmem:[#allocation7 + $0x74] ss:$8 sps:$4 sm:$0xff]   ;;  %v562_v22 = vld [vmem:[#allocation7 + $0x70] ss:$8 sps:$4 sm:$0xff]   ;;  %v563_v23 = vld [vmem:[#allocation7 + $0x84] ss:$8 sps:$4 sm:$0xff]  }
  0x3e   :  { %374 = vmatpush1.bf16.msra.mxu1 %v544_v10  ;;  %v565_v24 = vld [vmem:[#allocation7 + $0x80] ss:$8 sps:$4 sm:$0xff]   ;;  %v566_v25 = vld [vmem:[#allocation7 + $0x94] ss:$8 sps:$4 sm:$0xff]   ;;  %v568_v26 = vld [vmem:[#allocation7 + $0x90] ss:$8 sps:$4 sm:$0xff]  }
  0x3f   :  { %493 = vmatmul.mubr.msk.bf16.vlgmr.msra.gmra.mrb[0].mxu0 %vm136_vm0, %v59_v9  ;;  %375 = vmatprep.subr.bf16.mxu1 %v545_v11  ;;  %v569_v27 = vld [vmem:[#allocation7 + $0xa4] ss:$8 sps:$4 sm:$0xff]   ;;  %v571_v28 = vld [vmem:[#allocation7 + $0xa0] ss:$8 sps:$4 sm:$0xff]   ;;  %v572_v29 = vld [vmem:[#allocation7 + $0xb4] ss:$8 sps:$4 sm:$0xff]  }
  0x40   :  { %v574_v30 = vld [vmem:[#allocation7 + $0xb0] ss:$8 sps:$4 sm:$0xff]   ;;  %v575_v31 = vld [vmem:[#allocation7 + $0xc4] ss:$8 sps:$4 sm:$0xff]   ;;  %v577_v32 = vld [vmem:[#allocation7 + $0xc0] ss:$8 sps:$4 sm:$0xff]  }
  0x41   :  { %v578_v33 = vld [vmem:[#allocation7 + $0xd4] ss:$8 sps:$4 sm:$0xff]   ;;  %v580_v34 = vld [vmem:[#allocation7 + $0xd0] ss:$8 sps:$4 sm:$0xff]   ;;  %v581_v35 = vld [vmem:[#allocation7 + $0xe4] ss:$8 sps:$4 sm:$0xff]  }
  0x42   :  { %376 = vmatpush1.bf16.msra.mxu1 %v547_v12  ;;  %v583_v36 = vld [vmem:[#allocation7 + $0xe0] ss:$8 sps:$4 sm:$0xff]   ;;  %v584_v37 = vld [vmem:[#allocation7 + $0xf4] ss:$8 sps:$4 sm:$0xff]   ;;  %v586_v38 = vld [vmem:[#allocation7 + $0xf0] ss:$8 sps:$4 sm:$0xff]  }
  0x43   :  { %377 = vmatprep.subr.bf16.mxu1 %v548_v13  ;;  %v100_v41 = vsub.s32 0, %v761_v40  ;;  %v767_v42 = vld [vmem:[%s799_s3] sm:$0xff]  ;;  %v104_v43 = vsub.s32 4, %v761_v40  ;;  %v195_v2 = vsub.s32 1, %v761_v40  ;;  %v199_v3 = vsub.s32 5, %v761_v40  ;;  %s693_s3 = smov [#allocation8]  }
  0x44   :  { %s479_s26 = sshll.u32 %s693_s3, 4  ;;  %s480_s26 = int_to_ptr.vmem [resolvable:$true] %s479_s26 }
  0x45   :  { %v101_v44 = vrot.slane %v767_v42, %v100_v41  ;;  %v105_v45 = vrot.slane %v767_v42, %v104_v43  ;;  %v196_v4 = vrot.slane %v767_v42, %v195_v2  ;;  %v200_v5 = vrot.slane %v767_v42, %v199_v3  ;;  %s659_s27 = scalar_lea.vmem %s480_s26, 256  ;;  %p664_p11 = scmp.lt.s32.totalorder %s480_s26, %s480_s26 }
  0x46   :  { %378 = vmatpush1.bf16.msra.mxu1 %v550_v14  ;;  %p660_p10 = scmp.ne.s32.totalorder %s480_s26, %s659_s27  ;;  %p665_p12 = scmp.lt.s32.totalorder %s659_s27, %s659_s27 }
  0x47   :  { %379 = vmatprep.subr.bf16.mxu1 %v551_v15  ;;  %v111_v46 = vrot.slane %v101_v44, %v100_v41  ;;  %v115_v47 = vrot.slane %v105_v45, %v100_v41  ;;  %v206_v6 = vrot.slane %v196_v4, %v195_v2  ;;  %v210_v7 = vrot.slane %v200_v5, %v195_v2 }
  0x48   :  { %p666_p13 = por %p665_p12, %p664_p11 }
  0x4a   :  { %380 = vmatpush1.bf16.msra.mxu1 %v553_v16  ;;  %p667_p0 = pnand %p666_p13, %p660_p10 }
  0x4b   :  { %381 = vmatprep.subr.bf16.mxu1 %v554_v17 }
  0x4e   :  { %382 = vmatpush1.bf16.msra.mxu1 %v556_v18 }
  0x4f   :  { %383 = vmatprep.subr.bf16.mxu1 %v557_v19 }
  0x52   :  { %384 = vmatpush1.bf16.msra.mxu1 %v559_v20 }
  0x53   :  { %385 = vmatprep.subr.bf16.mxu1 %v560_v21 }
  0x56   :  { %386 = vmatpush1.bf16.msra.mxu1 %v562_v22 }
  0x57   :  { %387 = vmatprep.subr.bf16.mxu1 %v563_v23 }
  0x5a   :  { %388 = vmatpush1.bf16.msra.mxu1 %v565_v24 }
  0x5b   :  { %389 = vmatprep.subr.bf16.mxu1 %v566_v25 }
  0x5e   :  { %390 = vmatpush1.bf16.msra.mxu1 %v568_v26 }
  0x5f   :  { %391 = vmatprep.subr.bf16.mxu1 %v569_v27  ;;  %v433_v27 = vsub.s32 2, %v761_v40 }
  0x62   :  { %392 = vmatpush1.bf16.msra.mxu1 %v571_v28  ;;  %v437_v28 = vsub.s32 6, %v761_v40 }
  0x63   :  { %393 = vmatprep.subr.bf16.mxu1 %v572_v29  ;;  %v453_v29 = vsub.s32 3, %v761_v40 }
  0x66   :  { %394 = vmatpush1.bf16.msra.mxu1 %v574_v30  ;;  %v457_v30 = vsub.s32 7, %v761_v40 }
  0x67   :  { %395 = vmatprep.subr.bf16.mxu1 %v575_v31  ;;  %v434_v31 = vrot.slane %v767_v42, %v433_v27 }
  0x6a   :  { %396 = vmatpush1.bf16.msra.mxu1 %v577_v32  ;;  %v438_v32 = vrot.slane %v767_v42, %v437_v28 }
  0x6b   :  { %397 = vmatprep.subr.bf16.mxu1 %v578_v33  ;;  %v454_v33 = vrot.slane %v767_v42, %v453_v29 }
  0x6d   :  { %v464_v41 = vrot.slane %v454_v33, %v453_v29 }
  0x6e   :  { %398 = vmatpush1.bf16.msra.mxu1 %v580_v34  ;;  %v458_v34 = vrot.slane %v767_v42, %v457_v30 }
  0x6f   :  { %399 = vmatprep.subr.bf16.mxu1 %v581_v35  ;;  %v444_v35 = vrot.slane %v434_v31, %v433_v27 }
  0x70   :  { %v468_v43 = vrot.slane %v458_v34, %v453_v29 }
  0x72   :  { %400 = vmatpush1.bf16.msra.mxu1 %v583_v36  ;;  %v448_v36 = vrot.slane %v438_v32, %v433_v27 }
  0x73   :  { %401 = vmatprep.subr.bf16.mxu1 %v584_v37 }
  0x76   :  { %402 = vmatpush1.bf16.msra.mxu1 %v586_v38 }
 0x112   :  { %v174_v48 = vpop.f32.mrb[0].mxu0 }
 0x113   :  { %v175_v49 = vadd.f32 %v174_v48, %v111_v46  ;;  %v176_v50 = vpop.f32.mrb[1].mxu0 }
 0x114   :  { %v177_v51 = vadd.f32 %v176_v50, %v115_v47  ;;  %v178_v52 = vpop.f32.mrb[2].mxu0 }
 0x115   :  { %v183_v53 = vmul.f32 0.70710677, %v175_v49  ;;  %v179_v54 = vpop.f32.mrb[3].mxu0  ;;  %v181_v58 = vmul.f32 0.5, %v175_v49 }
 0x116   :  { %v184_v55 = vmul.f32 0.70710677, %v177_v51  ;;  %v182_v60 = vmul.f32 0.5, %v177_v51 }
 0x117   :  { %587 = verf.f32 %v183_v53 }
 0x118   :  { %589 = verf.f32 %v184_v55 }
 0x121   :  { %v588_v56 = vpop.eup %587 }
 0x122   :  { %v590_v57 = vpop.eup %589  ;;  %v187_v59 = vadd.f32 1.0, %v588_v56 }
 0x123   :  { %v188_v61 = vadd.f32 1.0, %v590_v57 }
 0x124   :  { %v189_v62 = vmul.f32 %v187_v59, %v181_v58 }
 0x125   :  { %v190_v63 = vmul.f32 %v188_v61, %v182_v60 }
 0x126   :  { %v191_v1 = vpack.c.bf16 %v189_v62, %v189_v62 }
 0x127   :  { %v192_v0 = vpack.c.bf16 %v190_v63, %v190_v63 }
 0x129   :  { %403 = vmatprep.mubr.bf16.mxu1 %v192_v0 }
 0x12a   :  { %404 = vmatmul.mubr.bf16.vlgmr.msra.gmra.mrb[0].mxu1 %v191_v1 }
 0x1fd   :  { %v405_v8 = vpop.f32.mrb[0].mxu1 }
 0x1fe   :  { %v406_v9 = vadd.f32 %v405_v8, %v206_v6  ;;  %v407_v10 = vpop.f32.mrb[1].mxu1 }
 0x1ff   :  { %v408_v11 = vadd.f32 %v407_v10, %v210_v7  ;;  %v409_v12 = vpop.f32.mrb[2].mxu1 }
 0x200   :  { %v410_v13 = vpop.f32.mrb[3].mxu1  ;;  %v412_v14 = vadd.f32 %v406_v9, %v175_v49 }
 0x201   :  { %v413_v15 = vadd.f32 %v408_v11, %v177_v51 }
 0x203   :  { %v414_v16 = vadd.f32 %v413_v15, %v412_v14 }
 0x205   :  { %415 = vadd.xlane.f32.xlu0 %v414_v16 }
 0x292   :  { %v416_v17 = vpop.xlane.xlu0 %415 }
 0x293   :  { %v418_v18 = vmul.f32 0.00390625, %v416_v17 }
 0x295   :  { %v419_v19 = vsub.f32 %v412_v14, %v418_v18  ;;  %v420_v20 = vsub.f32 %v413_v15, %v418_v18 }
 0x297   :  { %v421_v21 = vmul.f32 %v419_v19, %v419_v19  ;;  %v422_v22 = vmul.f32 %v420_v20, %v420_v20 }
 0x299   :  { %v423_v23 = vadd.f32 %v422_v22, %v421_v21 }
 0x29b   :  { %424 = vadd.xlane.f32.xlu0 %v423_v23 }
 0x328   :  { %v425_v24 = vpop.xlane.xlu0 %424 }
 0x329   :  { %v426_v25 = vmul.f32 0.00390625, %v425_v24 }
 0x32b   :  { %v427_v26 = vadd.f32 1e-05, %v426_v25 }
 0x32d   :  { %591 = vrsqrt.f32 %v427_v26 }
 0x337   :  { %v592_v37 = vpop.eup %591 }
 0x338   :  { %v429_v38 = vmul.f32 %v592_v37, %v419_v19  ;;  %v430_v39 = vmul.f32 %v592_v37, %v420_v20 }
 0x33a   :  { %v449_v44 = vmul.f32 %v444_v35, %v429_v38  ;;  %v450_v45 = vmul.f32 %v448_v36, %v430_v39 }
 0x33c   :  { %v469_v40 = vadd.f32 %v464_v41, %v449_v44  ;;  %v470_v46 = vadd.f32 %v468_v43, %v450_v45 }
 0x33e   :  { %471 = vst [vmem:[#allocation8] sm:$0xff] %v469_v40  ;;  %472 = vst [vmem:[#allocation8 + $0x8] sm:$0xff] %v470_v46 }
 0x33f   :  { %670 = shalt.err (!%p667_p0)
}
 0x340   :  { %s671_s30 = scalar_lea.hbm %s800_s4, 256 }
 0x341   :  { %p672_p1 = scmp.ne.s32.totalorder %s800_s4, %s671_s30  ;;  %p675_p2 = scmp.lt.u32.totalorder %s671_s30, %s800_s4 }
 0x343   :  { %p677_p3 = pnand %p675_p2, %p672_p1 }
 0x345   :  { %680 = shalt.err (!%p677_p3)
}
 0x346   :  { %482 = dma.vmem_to_hbm [thread:$0]  %s480_s26, 256, %s800_s4, [#allocation4]  }
 0x347   :  { %685 = dma.done.wait [#allocation4], 256  }
 0x348   :  { %686 = vsyncadd [#allocation4], 4294967040 }
 0x349   :  { %486 = vsyncpa [#allocation3], 1 }
 0x34a   :  { %487 = vsyncpa [#allocation6], 1 }
 0x34b   :  { %488 = vsyncpa [#allocation4], 1 }

// kernel: tpu_custom_call.1
= control target key start
LH: loop header
LB: loop body
LE: loop exit
PB: predicated region body
PF: predicated region fallthrough
CT: control target
= control target key end

     0   :  { %9 = vsyncpa [#allocation3], 0  ;;  %s796_s0 = inlined_call_operand.hbm [shape: f32[8,32], index: 0, kind: input, shape index: {}]   ;;  %s797_s1 = inlined_call_operand.hbm [shape: bf16[32,256], index: 1, kind: input, shape index: {}]   ;;  %s798_s2 = inlined_call_operand.hbm [shape: bf16[256,256], index: 2, kind: input, shape index: {}]   ;;  %s799_s3 = inlined_call_operand.vmem [shape: f32[4,256], index: 3, kind: input, shape index: {}]   ;;  %s800_s4 = inlined_call_operand.hbm [shape: f32[8,256], index: 4, kind: output, shape index: {}]  }
   0x1   :  { %10 = vsyncpa [#allocation6], 0 }
   0x2   :  { %11 = vsyncpa [#allocation4], 0  ;;  %s687_s15 = smov [#allocation5]   ;;  %s593_s19 = scalar_lea.hbm %s797_s1, 512 }
   0x3   :  { %s27_s16 = sshll.u32 %s687_s15, 4  ;;  %p594_p0 = scmp.ne.s32.totalorder %s797_s1, %s593_s19  ;;  %s28_s16 = int_to_ptr.vmem [resolvable:$true] %s27_s16 }
   0x4   :  { %p597_p1 = scmp.lt.u32.totalorder %s593_s19, %s797_s1 }
   0x6   :  { %p599_p2 = pnand %p597_p1, %p594_p0 }
   0x8   :  { %602 = shalt.err (!%p599_p2)
}
   0x9   :  { %s603_s24 = scalar_lea.vmem %s28_s16, 512  ;;  %p608_p4 = scmp.lt.s32.totalorder %s28_s16, %s28_s16 }
   0xa   :  { %p604_p3 = scmp.ne.s32.totalorder %s28_s16, %s603_s24  ;;  %p609_p5 = scmp.lt.s32.totalorder %s603_s24, %s603_s24 }
   0xc   :  { %p610_p6 = por %p609_p5, %p608_p4 }
   0xe   :  { %p611_p7 = pnand %p610_p6, %p604_p3 }
  0x10   :  { %614 = shalt.err (!%p611_p7)
}
  0x11   :  { %s688_s25 = smov 128   ;;  %s689_s26 = smov 8  }
  0x12   :  { %33 = dma.hbm_to_vmem [thread:$0]  %s797_s1, 512, %s28_s16, [#allocation6], %s688_s25, %s688_s25, %s689_s26  }
  0x13   :  { %s690_s29 = smov [#allocation2]   ;;  %s691_s5 = smov [#allocation7]  }
  0x14   :  { %s18_s30 = sshll.u32 %s690_s29, 4  ;;  %s39_s6 = sshll.u32 %s691_s5, 4  ;;  %s19_s30 = int_to_ptr.vmem [resolvable:$true] %s18_s30  ;;  %s40_s6 = int_to_ptr.vmem [resolvable:$true] %s39_s6 }
  0x15   :  { %s615_s9 = scalar_lea.hbm %s796_s0, 128 }
  0x16   :  { %p616_p8 = scmp.ne.s32.totalorder %s796_s0, %s615_s9  ;;  %p619_p9 = scmp.lt.u32.totalorder %s615_s9, %s796_s0 }
  0x18   :  { %p621_p10 = pnand %p619_p9, %p616_p8 }
  0x1a   :  { %624 = shalt.err (!%p621_p10)
}
  0x1b   :  { %s625_s1 = scalar_lea.vmem %s19_s30, 128  ;;  %p630_p12 = scmp.lt.s32.totalorder %s19_s30, %s19_s30 }
  0x1c   :  { %p626_p11 = scmp.ne.s32.totalorder %s19_s30, %s625_s1  ;;  %p631_p13 = scmp.lt.s32.totalorder %s625_s1, %s625_s1 }
  0x1e   :  { %p632_p0 = por %p631_p13, %p630_p12 }
  0x20   :  { %p633_p1 = pnand %p632_p0, %p626_p11 }
  0x22   :  { %636 = shalt.err (!%p633_p1)
}
  0x23   :  { %21 = dma.hbm_to_vmem [thread:$0]  %s796_s0, 128, %s19_s30, [#allocation3]  }
  0x24   :  { %s637_s18 = scalar_lea.hbm %s798_s2, 4096 }
  0x25   :  { %p638_p2 = scmp.ne.s32.totalorder %s798_s2, %s637_s18  ;;  %p641_p3 = scmp.lt.u32.totalorder %s637_s18, %s798_s2 }
  0x27   :  { %p643_p4 = pnand %p641_p3, %p638_p2 }
  0x29   :  { %646 = shalt.err (!%p643_p4)
}
  0x2a   :  { %s647_s23 = scalar_lea.vmem %s40_s6, 4096  ;;  %p652_p6 = scmp.lt.s32.totalorder %s40_s6, %s40_s6 }
  0x2b   :  { %p648_p5 = scmp.ne.s32.totalorder %s40_s6, %s647_s23  ;;  %p653_p7 = scmp.lt.s32.totalorder %s647_s23, %s647_s23 }
  0x2d   :  { %p654_p8 = por %p653_p7, %p652_p6 }
  0x2f   :  { %p655_p9 = pnand %p654_p8, %p648_p5 }
  0x31   :  { %658 = shalt.err (!%p655_p9)
}
  0x32   :  { %45 = dma.hbm_to_vmem [thread:$0]  %s798_s2, 4096, %s40_s6, [#allocation6], %s688_s25, %s688_s25, %s689_s26  }
  0x33   :  { %681 = dma.done.wait [#allocation3], 128  }
  0x34   :  { %682 = vsyncadd [#allocation3], 4294967168 }
  0x35   :  { %683 = dma.done.wait [#allocation6], 4608  }
  0x36   :  { %684 = vsyncadd [#allocation6], 4294962688  ;;  %v692_v0 = vmov 0   ;;  %v533_v1 = vld [vmem:[#allocation5 + $0x4] ss:$8 sps:$4 sm:$0xff]   ;;  %v58_v5 = vld [vmem:[#allocation2] sm:$0xff]  ;;  %v98_v39 = vlaneseq }
  0x37   :  { %172 = vmatprep.mubr.bf16.mxu0 %v692_v0  ;;  %v535_v2 = vld [vmem:[#allocation5] ss:$8 sps:$4 sm:$0xff]   ;;  %140 = vmatprep.subr.bf16.mxu0 %v533_v1  ;;  %v536_v3 = vld [vmem:[#allocation5 + $0x14] ss:$8 sps:$4 sm:$0xff]   ;;  %v538_v4 = vld [vmem:[#allocation5 + $0x10] ss:$8 sps:$4 sm:$0xff]   ;;  %v59_v9 = vpack.c.bf16 %v58_v5, %v58_v5 }
  0x38   :  { %141 = vmatpush1.bf16.msra.mxu0 %v535_v2  ;;  %v539_v6 = vld [vmem:[#allocation7 + $0x4] ss:$8 sps:$4 sm:$0xff]   ;;  %v541_v7 = vld [vmem:[#allocation7] ss:$8 sps:$4 sm:$0xff]   ;;  %v542_v8 = vld [vmem:[#allocation7 + $0x14] ss:$8 sps:$4 sm:$0xff]  }
  0x39   :  { %142 = vmatprep.subr.bf16.mxu0 %v536_v3  ;;  %371 = vmatprep.subr.bf16.mxu1 %v539_v6  ;;  %v544_v10 = vld [vmem:[#allocation7 + $0x10] ss:$8 sps:$4 sm:$0xff]   ;;  %vm136_vm0 = vcmask 261120   ;;  %v545_v11 = vld [vmem:[#allocation7 + $0x24] ss:$8 sps:$4 sm:$0xff]   ;;  %v761_v40 = vshrl.u32 %v98_v39, 7 }
  0x3a   :  { %372 = vmatpush1.bf16.msra.mxu1 %v541_v7  ;;  %v547_v12 = vld [vmem:[#allocation7 + $0x20] ss:$8 sps:$4 sm:$0xff]   ;;  %v548_v13 = vld [vmem:[#allocation7 + $0x34] ss:$8 sps:$4 sm:$0xff]   ;;  %v550_v14 = vld [vmem:[#allocation7 + $0x30] ss:$8 sps:$4 sm:$0xff]  }
  0x3b   :  { %373 = vmatprep.subr.bf16.mxu1 %v542_v8  ;;  %v551_v15 = vld [vmem:[#allocation7 + $0x44] ss:$8 sps:$4 sm:$0xff]   ;;  %v553_v16 = vld [vmem:[#allocation7 + $0x40] ss:$8 sps:$4 sm:$0xff]   ;;  %v554_v17 = vld [vmem:[#allocation7 + $0x54] ss:$8 sps:$4 sm:$0xff]  }
  0x3c   :  { %143 = vmatpush1.bf16.msra.mxu0 %v538_v4  ;;  %v556_v18 = vld [vmem:[#allocation7 + $0x50] ss:$8 sps:$4 sm:$0xff]   ;;  %v557_v19 = vld [vmem:[#allocation7 + $0x64] ss:$8 sps:$4 sm:$0xff]   ;;  %v559_v20 = vld [vmem:[#allocation7 + $0x60] ss:$8 sps:$4 sm:$0xff]  }
  0x3d   :  { %v560_v21 = vld [vmem:[#allocation7 + $0x74] ss:$8 sps:$4 sm:$0xff]   ;;  %v562_v22 = vld [vmem:[#allocation7 + $0x70] ss:$8 sps:$4 sm:$0xff]   ;;  %v563_v23 = vld [vmem:[#allocation7 + $0x84] ss:$8 sps:$4 sm:$0xff]  }
  0x3e   :  { %374 = vmatpush1.bf16.msra.mxu1 %v544_v10  ;;  %v565_v24 = vld [vmem:[#allocation7 + $0x80] ss:$8 sps:$4 sm:$0xff]   ;;  %v566_v25 = vld [vmem:[#allocation7 + $0x94] ss:$8 sps:$4 sm:$0xff]   ;;  %v568_v26 = vld [vmem:[#allocation7 + $0x90] ss:$8 sps:$4 sm:$0xff]  }
  0x3f   :  { %493 = vmatmul.mubr.msk.bf16.vlgmr.msra.gmra.mrb[0].mxu0 %vm136_vm0, %v59_v9  ;;  %375 = vmatprep.subr.bf16.mxu1 %v545_v11  ;;  %v569_v27 = vld [vmem:[#allocation7 + $0xa4] ss:$8 sps:$4 sm:$0xff]   ;;  %v571_v28 = vld [vmem:[#allocation7 + $0xa0] ss:$8 sps:$4 sm:$0xff]   ;;  %v572_v29 = vld [vmem:[#allocation7 + $0xb4] ss:$8 sps:$4 sm:$0xff]  }
  0x40   :  { %v574_v30 = vld [vmem:[#allocation7 + $0xb0] ss:$8 sps:$4 sm:$0xff]   ;;  %v575_v31 = vld [vmem:[#allocation7 + $0xc4] ss:$8 sps:$4 sm:$0xff]   ;;  %v577_v32 = vld [vmem:[#allocation7 + $0xc0] ss:$8 sps:$4 sm:$0xff]  }
  0x41   :  { %v578_v33 = vld [vmem:[#allocation7 + $0xd4] ss:$8 sps:$4 sm:$0xff]   ;;  %v580_v34 = vld [vmem:[#allocation7 + $0xd0] ss:$8 sps:$4 sm:$0xff]   ;;  %v581_v35 = vld [vmem:[#allocation7 + $0xe4] ss:$8 sps:$4 sm:$0xff]  }
  0x42   :  { %376 = vmatpush1.bf16.msra.mxu1 %v547_v12  ;;  %v583_v36 = vld [vmem:[#allocation7 + $0xe0] ss:$8 sps:$4 sm:$0xff]   ;;  %v584_v37 = vld [vmem:[#allocation7 + $0xf4] ss:$8 sps:$4 sm:$0xff]   ;;  %v586_v38 = vld [vmem:[#allocation7 + $0xf0] ss:$8 sps:$4 sm:$0xff]  }
  0x43   :  { %377 = vmatprep.subr.bf16.mxu1 %v548_v13  ;;  %v100_v41 = vsub.s32 0, %v761_v40  ;;  %v767_v42 = vld [vmem:[%s799_s3] sm:$0xff]  ;;  %v104_v43 = vsub.s32 4, %v761_v40  ;;  %v195_v2 = vsub.s32 1, %v761_v40  ;;  %v199_v3 = vsub.s32 5, %v761_v40  ;;  %s693_s3 = smov [#allocation8]  }
  0x44   :  { %s479_s26 = sshll.u32 %s693_s3, 4  ;;  %s480_s26 = int_to_ptr.vmem [resolvable:$true] %s479_s26 }
  0x45   :  { %v101_v44 = vrot.slane %v767_v42, %v100_v41  ;;  %v105_v45 = vrot.slane %v767_v42, %v104_v43  ;;  %v196_v4 = vrot.slane %v767_v42, %v195_v2  ;;  %v200_v5 = vrot.slane %v767_v42, %v199_v3  ;;  %s659_s27 = scalar_lea.vmem %s480_s26, 256  ;;  %p664_p11 = scmp.lt.s32.totalorder %s480_s26, %s480_s26 }
  0x46   :  { %378 = vmatpush1.bf16.msra.mxu1 %v550_v14  ;;  %p660_p10 = scmp.ne.s32.totalorder %s480_s26, %s659_s27  ;;  %p665_p12 = scmp.lt.s32.totalorder %s659_s27, %s659_s27 }
  0x47   :  { %379 = vmatprep.subr.bf16.mxu1 %v551_v15  ;;  %v111_v46 = vrot.slane %v101_v44, %v100_v41  ;;  %v115_v47 = vrot.slane %v105_v45, %v100_v41  ;;  %v206_v6 = vrot.slane %v196_v4, %v195_v2  ;;  %v210_v7 = vrot.slane %v200_v5, %v195_v2 }
  0x48   :  { %p666_p13 = por %p665_p12, %p664_p11 }
  0x4a   :  { %380 = vmatpush1.bf16.msra.mxu1 %v553_v16  ;;  %p667_p0 = pnand %p666_p13, %p660_p10 }
  0x4b   :  { %381 = vmatprep.subr.bf16.mxu1 %v554_v17 }
  0x4e   :  { %382 = vmatpush1.bf16.msra.mxu1 %v556_v18 }
  0x4f   :  { %383 = vmatprep.subr.bf16.mxu1 %v557_v19 }
  0x52   :  { %384 = vmatpush1.bf16.msra.mxu1 %v559_v20 }
  0x53   :  { %385 = vmatprep.subr.bf16.mxu1 %v560_v21 }
  0x56   :  { %386 = vmatpush1.bf16.msra.mxu1 %v562_v22 }
  0x57   :  { %387 = vmatprep.subr.bf16.mxu1 %v563_v23 }
  0x5a   :  { %388 = vmatpush1.bf16.msra.mxu1 %v565_v24 }
  0x5b   :  { %389 = vmatprep.subr.bf16.mxu1 %v566_v25 }
  0x5e   :  { %390 = vmatpush1.bf16.msra.mxu1 %v568_v26 }
  0x5f   :  { %391 = vmatprep.subr.bf16.mxu1 %v569_v27  ;;  %v433_v27 = vsub.s32 2, %v761_v40 }
  0x62   :  { %392 = vmatpush1.bf16.msra.mxu1 %v571_v28  ;;  %v437_v28 = vsub.s32 6, %v761_v40 }
  0x63   :  { %393 = vmatprep.subr.bf16.mxu1 %v572_v29  ;;  %v453_v29 = vsub.s32 3, %v761_v40 }
  0x66   :  { %394 = vmatpush1.bf16.msra.mxu1 %v574_v30  ;;  %v457_v30 = vsub.s32 7, %v761_v40 }
  0x67   :  { %395 = vmatprep.subr.bf16.mxu1 %v575_v31  ;;  %v434_v31 = vrot.slane %v767_v42, %v433_v27 }
  0x6a   :  { %396 = vmatpush1.bf16.msra.mxu1 %v577_v32  ;;  %v438_v32 = vrot.slane %v767_v42, %v437_v28 }
  0x6b   :  { %397 = vmatprep.subr.bf16.mxu1 %v578_v33  ;;  %v454_v33 = vrot.slane %v767_v42, %v453_v29 }
  0x6d   :  { %v464_v41 = vrot.slane %v454_v33, %v453_v29 }
  0x6e   :  { %398 = vmatpush1.bf16.msra.mxu1 %v580_v34  ;;  %v458_v34 = vrot.slane %v767_v42, %v457_v30 }
  0x6f   :  { %399 = vmatprep.subr.bf16.mxu1 %v581_v35  ;;  %v444_v35 = vrot.slane %v434_v31, %v433_v27 }
  0x70   :  { %v468_v43 = vrot.slane %v458_v34, %v453_v29 }
  0x72   :  { %400 = vmatpush1.bf16.msra.mxu1 %v583_v36  ;;  %v448_v36 = vrot.slane %v438_v32, %v433_v27 }
  0x73   :  { %401 = vmatprep.subr.bf16.mxu1 %v584_v37 }
  0x76   :  { %402 = vmatpush1.bf16.msra.mxu1 %v586_v38 }
 0x112   :  { %v174_v48 = vpop.f32.mrb[0].mxu0 }
 0x113   :  { %v175_v49 = vadd.f32 %v174_v48, %v111_v46  ;;  %v176_v50 = vpop.f32.mrb[1].mxu0 }
 0x114   :  { %v177_v51 = vadd.f32 %v176_v50, %v115_v47  ;;  %v178_v52 = vpop.f32.mrb[2].mxu0 }
 0x115   :  { %v183_v53 = vmul.f32 0.70710677, %v175_v49  ;;  %v179_v54 = vpop.f32.mrb[3].mxu0  ;;  %v181_v58 = vmul.f32 0.5, %v175_v49 }
 0x116   :  { %v184_v55 = vmul.f32 0.70710677, %v177_v51  ;;  %v182_v60 = vmul.f32 0.5, %v177_v51 }
 0x117   :  { %587 = verf.f32 %v183_v53 }
 0x118   :  { %589 = verf.f32 %v184_v55 }
 0x121   :  { %v588_v56 = vpop.eup %587 }
 0x122   :  { %v590_v57 = vpop.eup %589  ;;  %v187_v59 = vadd.f32 1.0, %v588_v56 }
 0x123   :  { %v188_v61 = vadd.f32 1.0, %v590_v57 }
 0x124   :  { %v189_v62 = vmul.f32 %v187_v59, %v181_v58 }
 0x125   :  { %v190_v63 = vmul.f32 %v188_v61, %v182_v60 }
 0x126   :  { %v191_v1 = vpack.c.bf16 %v189_v62, %v189_v62 }
 0x127   :  { %v192_v0 = vpack.c.bf16 %v190_v63, %v190_v63 }
 0x129   :  { %403 = vmatprep.mubr.bf16.mxu1 %v192_v0 }
 0x12a   :  { %404 = vmatmul.mubr.bf16.vlgmr.msra.gmra.mrb[0].mxu1 %v191_v1 }
 0x1fd   :  { %v405_v8 = vpop.f32.mrb[0].mxu1 }
 0x1fe   :  { %v406_v9 = vadd.f32 %v405_v8, %v206_v6  ;;  %v407_v10 = vpop.f32.mrb[1].mxu1 }
 0x1ff   :  { %v408_v11 = vadd.f32 %v407_v10, %v210_v7  ;;  %v409_v12 = vpop.f32.mrb[2].mxu1 }
 0x200   :  { %v410_v13 = vpop.f32.mrb[3].mxu1  ;;  %v412_v14 = vadd.f32 %v406_v9, %v175_v49 }
 0x201   :  { %v413_v15 = vadd.f32 %v408_v11, %v177_v51 }
 0x203   :  { %v414_v16 = vadd.f32 %v413_v15, %v412_v14 }
 0x205   :  { %415 = vadd.xlane.f32.xlu0 %v414_v16 }
 0x292   :  { %v416_v17 = vpop.xlane.xlu0 %415 }
 0x293   :  { %v418_v18 = vmul.f32 0.00390625, %v416_v17 }
 0x295   :  { %v419_v19 = vsub.f32 %v412_v14, %v418_v18  ;;  %v420_v20 = vsub.f32 %v413_v15, %v418_v18 }
 0x297   :  { %v421_v21 = vmul.f32 %v419_v19, %v419_v19  ;;  %v422_v22 = vmul.f32 %v420_v20, %v420_v20 }
 0x299   :  { %v423_v23 = vadd.f32 %v422_v22, %v421_v21 }
 0x29b   :  { %424 = vadd.xlane.f32.xlu0 %v423_v23 }
 0x328   :  { %v425_v24 = vpop.xlane.xlu0 %424 }
 0x329   :  { %v426_v25 = vmul.f32 0.00390625, %v425_v24 }
 0x32b   :  { %v427_v26 = vadd.f32 1e-05, %v426_v25 }
 0x32d   :  { %591 = vrsqrt.f32 %v427_v26 }
 0x337   :  { %v592_v37 = vpop.eup %591 }
 0x338   :  { %v429_v38 = vmul.f32 %v592_v37, %v419_v19  ;;  %v430_v39 = vmul.f32 %v592_v37, %v420_v20 }
 0x33a   :  { %v449_v44 = vmul.f32 %v444_v35, %v429_v38  ;;  %v450_v45 = vmul.f32 %v448_v36, %v430_v39 }
 0x33c   :  { %v469_v40 = vadd.f32 %v464_v41, %v449_v44  ;;  %v470_v46 = vadd.f32 %v468_v43, %v450_v45 }
 0x33e   :  { %471 = vst [vmem:[#allocation8] sm:$0xff] %v469_v40  ;;  %472 = vst [vmem:[#allocation8 + $0x8] sm:$0xff] %v470_v46 }
 0x33f   :  { %670 = shalt.err (!%p667_p0)
}
 0x340   :  { %s671_s30 = scalar_lea.hbm %s800_s4, 256 }
 0x341   :  { %p672_p1 = scmp.ne.s32.totalorder %s800_s4, %s671_s30  ;;  %p675_p2 = scmp.lt.u32.totalorder %s671_s30, %s800_s4 }
 0x343   :  { %p677_p3 = pnand %p675_p2, %p672_p1 }
 0x345   :  { %680 = shalt.err (!%p677_p3)
}
 0x346   :  { %482 = dma.vmem_to_hbm [thread:$0]  %s480_s26, 256, %s800_s4, [#allocation4]  }
 0x347   :  { %685 = dma.done.wait [#allocation4], 256  }
 0x348   :  { %686 = vsyncadd [#allocation4], 4294967040 }
 0x349   :  { %486 = vsyncpa [#allocation3], 1 }
 0x34a   :  { %487 = vsyncpa [#allocation6], 1 }
 0x34b   :  { %488 = vsyncpa [#allocation4], 1 }

</bundles_post_ra>
